<compile_context>
chip_gen: v6e
topology: v6e:2x2x1
jax: 0.10.0
libtpu: 0.0.40
codegen_flags: <defaults>
</compile_context>

<pallas_src>
import functools

import jax
import jax.numpy as jnp
from jax.experimental import pallas as pl
from jax.experimental.pallas import tpu as pltpu


_LANE_COLS = 1024                        # lane-dense slab width (multiple of 128)
_TARGET_BLOCK_BYTES = 8 * 1024 * 1024    # ~8 MiB per pipeline block
_VMEM_LIMIT_BYTES = 40 * 1024 * 1024     # 2 arrays x 2 bufs x 8 MiB + slack (< 64 MiB/TC)
_MIN_MULTI_STEP_BYTES = 4 * 1024 * 1024  # below this a single block is cheapest


def _leaky_relu_kernel(x_ref, o_ref, *, negative_slope):
    x = x_ref[...]
    o_ref[...] = jnp.where(x < 0, x * negative_slope, x)


def _round_up(a: int, b: int) -> int:
    return ((a + b - 1) // b) * b


def leaky_relu(x: jax.Array, negative_slope: float = 0.01) -> jax.Array:
    """Elementwise LeakyReLU via a Pallas TPU kernel. Preserves shape & dtype."""
    orig_shape = x.shape
    n = x.size
    if n == 0:
        return x

    dtype = x.dtype
    itemsize = jnp.dtype(dtype).itemsize
    packing = max(1, 4 // itemsize)       # values per 32-bit sublane slot (1/2/4)
    sublane_align = 8 * packing           # 8 rows f32, 16 bf16, 32 int8/fp8
    total_bytes = n * itemsize

    kernel = functools.partial(_leaky_relu_kernel, negative_slope=negative_slope)
    cost = pl.CostEstimate(flops=n, transcendentals=0, bytes_accessed=2 * total_bytes)
    cparams = pltpu.CompilerParams(
        dimension_semantics=("parallel",),
        vmem_limit_bytes=_VMEM_LIMIT_BYTES,
    )

    flat = x.reshape(-1)  # metadata-only: contiguous reshape, no HBM traffic

    if n % _LANE_COLS == 0:
        # ---------- 2-D lane-dense path (no padding needed) ----------
        cols = _LANE_COLS
        rows = n // cols
        if total_bytes <= _MIN_MULTI_STEP_BYTES:
            tile_rows = rows                      # single full block (always legal)
        else:
            target_rows = max(
                sublane_align,
                (_TARGET_BLOCK_BYTES // (cols * itemsize))
                // sublane_align * sublane_align,
            )
            # >= 4 grid steps -> >= 2 blocks per TensorCore on v7x megacore.
            quarter = _round_up(pl.cdiv(rows, 4), sublane_align)
            tile_rows = min(rows, max(sublane_align, min(target_rows, quarter)))
        grid = (pl.cdiv(rows, tile_rows),)        # ragged last block masked by Pallas

        out2d = pl.pallas_call(
            kernel,
            out_shape=jax.ShapeDtypeStruct((rows, cols), dtype),
            grid_spec=pltpu.PrefetchScalarGridSpec(
                num_scalar_prefetch=0,
                grid=grid,
                in_specs=[pl.BlockSpec((tile_rows, cols), lambda i: (i, 0))],
                out_specs=pl.BlockSpec((tile_rows, cols), lambda i: (i, 0)),
            ),
            compiler_params=cparams,
            cost_estimate=cost,
        )(flat.reshape(rows, cols))
        return out2d.reshape(orig_shape)

    # ---------- 1-D path for ragged sizes: no pad / slice round-trip ----------
    granule = _LANE_COLS * packing               # one fully packed (8,128)-tile worth
    if total_bytes <= _MIN_MULTI_STEP_BYTES:
        block_elems = n                          # block == full array dim: always legal
    else:
        target_elems = max(
            granule, (_TARGET_BLOCK_BYTES // itemsize) // granule * granule
        )
        quarter = _round_up(pl.cdiv(n, 4), granule)
        block_elems = max(granule, min(target_elems, quarter))
    grid = (pl.cdiv(n, block_elems),)            # ragged last block masked by Pallas

    out_flat = pl.pallas_call(
        kernel,
        out_shape=jax.ShapeDtypeStruct((n,), dtype),
        grid_spec=pltpu.PrefetchScalarGridSpec(
            num_scalar_prefetch=0,
            grid=grid,
            in_specs=[pl.BlockSpec((block_elems,), lambda i: (i,))],
            out_specs=pl.BlockSpec((block_elems,), lambda i: (i,)),
        ),
        compiler_params=cparams,
        cost_estimate=cost,
    )(flat)
    return out_flat.reshape(orig_shape)


if __name__ == "__main__":
    key = jax.random.PRNGKey(0)
    k0, k1, k2 = jax.random.split(key, 3)

    # NCHW activation (GAN/VAE chapter conventions), n % 1024 == 0 -> 2-D path.
    x = jax.random.normal(k0, (2, 4, 16, 16), dtype=jnp.float32)
    y_ref = jnp.where(x < 0, x * 0.01, x)
    y = jax.block_until_ready(leaky_relu(x, negative_slope=0.01))
    assert y.shape == x.shape and y.dtype == x.dtype
    assert jnp.array_equal(y, y_ref)

    # The module's own test shape (3, 100): ragged n=300 -> 1-D path, no pad/slice.
    x2 = jax.random.normal(k1, (3, 100), dtype=jnp.float32)
    y2_ref = jnp.where(x2 < 0, x2 * 0.01, x2)
    y2 = jax.block_until_ready(leaky_relu(x2, negative_slope=0.01))
    assert y2.shape == x2.shape and y2.dtype == x2.dtype
    assert jnp.array_equal(y2, y2_ref)

    # bf16 activation exercises the dtype-aware sublane alignment.
    x3 = jax.random.normal(k2, (2, 4, 16, 16), dtype=jnp.float32).astype(jnp.bfloat16)
    y3_ref = jnp.where(x3 < 0, x3 * 0.01, x3)
    y3 = jax.block_until_ready(leaky_relu(x3, negative_slope=0.01))
    assert y3.shape == x3.shape and y3.dtype == x3.dtype
    assert jnp.array_equal(y3, y3_ref)

    print("KERNEL_OK")
</pallas_src>

<mosaic_0001>
module attributes {stable_mosaic.version = 11 : i64} {
  func.func @_leaky_relu_kernel(%arg0: i32, %arg1: memref<2x1024xf32, #tpu.memory_space<vmem>>, %arg2: memref<2x1024xf32, #tpu.memory_space<vmem>>) attributes {dimension_semantics = [#tpu.dimension_semantics<parallel>], iteration_bounds = array<i64: 1>, scalar_prefetch = 0 : i64, scratch_operands = 0 : i64, tpu.core_type = #tpu.core_type<tc>, window_params = [{transform_indices = @transform_0, window_bounds = array<i64: 2, 1024>}, {transform_indices = @transform_1, window_bounds = array<i64: 2, 1024>}]} {
    %c0 = arith.constant 0 : index
    %c0_0 = arith.constant 0 : index
    %0 = vector.load %arg1[%c0, %c0_0] : memref<2x1024xf32, #tpu.memory_space<vmem>>, vector<2x1024xf32>
    %cst = arith.constant 0.000000e+00 : f32
    %1 = vector.broadcast %cst : f32 to vector<2x1024xf32>
    %2 = arith.cmpf olt, %0, %1 : vector<2x1024xf32>
    %cst_1 = arith.constant 0.00999999977 : f32
    %3 = vector.broadcast %cst_1 : f32 to vector<2x1024xf32>
    %4 = arith.mulf %0, %3 : vector<2x1024xf32>
    %5 = arith.select %2, %4, %0 : vector<2x1024xi1>, vector<2x1024xf32>
    %c0_2 = arith.constant 0 : index
    %c0_3 = arith.constant 0 : index
    %6 = vector.load %arg2[%c0_2, %c0_3] : memref<2x1024xf32, #tpu.memory_space<vmem>>, vector<2x1024xf32>
    tpu.vector_store %arg2[%c0_2, %c0_3], %5 {strides = array<i32>} : memref<2x1024xf32, #tpu.memory_space<vmem>>, vector<2x1024xf32>,
    return
  }
  func.func @transform_0(%arg0: i32) -> (i32, i32) {
    %c0_i32 = arith.constant 0 : i32
    %c0_i32_0 = arith.constant 0 : i32
    return %arg0, %c0_i32 : i32, i32
  }
  func.func @transform_1(%arg0: i32) -> (i32, i32) {
    %c0_i32 = arith.constant 0 : i32
    %c0_i32_0 = arith.constant 0 : i32
    return %arg0, %c0_i32 : i32, i32
  }
}

</mosaic_0001>

<bundles_post_ra>
// kernel: tpu_custom_call.1
= control target key start
LH: loop header
LB: loop body
LE: loop exit
PB: predicated region body
PF: predicated region fallthrough
CT: control target
= control target key end

     0   :  { %6 = vsyncpa [#allocation3], 0  ;;  %s110_s0 = inlined_call_operand.hbm [shape: f32[2,1024], index: 0, kind: input, shape index: {}]   ;;  %s111_s1 = inlined_call_operand.hbm [shape: f32[2,1024], index: 1, kind: output, shape index: {}]  }
   0x1   :  { %7 = vsyncpa [#allocation4], 0  ;;  %s92_s6 = smov [#allocation2]  }
   0x2   :  { %s14_s7 = sshll.u32 %s92_s6, 4  ;;  %s15_s7 = int_to_ptr.vmem [resolvable:$true] %s14_s7 }
   0x3   :  { %s56_s8 = scalar_lea.vmem %s15_s7, 256  ;;  %p61_p1 = scmp.lt.s32.totalorder %s15_s7, %s15_s7 }
   0x4   :  { %p57_p0 = scmp.ne.s32.totalorder %s15_s7, %s56_s8  ;;  %p62_p2 = scmp.lt.s32.totalorder %s56_s8, %s56_s8 }
   0x6   :  { %p63_p3 = por %p62_p2, %p61_p1 }
   0x8   :  { %p64_p4 = pnand %p63_p3, %p57_p0 }
   0xa   :  { %67 = shalt.err (!%p64_p4)
}
   0xb   :  { %17 = dma.hbm_to_vmem [thread:$0]  %s110_s0, 256, %s15_s7, [#allocation3]  }
   0xc   :  { %88 = dma.done.wait [#allocation3], 256  }
   0xd   :  { %89 = vsyncadd [#allocation3], 4294967040  ;;  %s93_s11 = smov [#allocation5]   ;;  %v21_v0 = vld [vmem:[#allocation2] sm:$0xff]  ;;  %v22_v1 = vld [vmem:[#allocation2 + $0x8] sm:$0xff] }
   0xe   :  { %s37_s12 = sshll.u32 %s93_s11, 4  ;;  %vm23_vm0 = vcmp.lt.f32.partialorder %v21_v0, 0.0  ;;  %v25_v2 = vmul.f32 0.01, %v21_v0  ;;  %vm24_vm1 = vcmp.lt.f32.partialorder %v22_v1, 0.0  ;;  %s38_s12 = int_to_ptr.vmem [resolvable:$true] %s37_s12 }
   0xf   :  { %v26_v3 = vmul.f32 0.01, %v22_v1  ;;  %s68_s13 = scalar_lea.vmem %s38_s12, 256  ;;  %p73_p6 = scmp.lt.s32.totalorder %s38_s12, %s38_s12 }
  0x10   :  { %v27_v4 = vsel %vm23_vm0, %v25_v2, %v21_v0  ;;  %p69_p5 = scmp.ne.s32.totalorder %s38_s12, %s68_s13  ;;  %p74_p7 = scmp.lt.s32.totalorder %s68_s13, %s68_s13 }
  0x11   :  { %v28_v5 = vsel %vm24_vm1, %v26_v3, %v22_v1  ;;  %29 = vst [vmem:[#allocation5] sm:$0xff] %v27_v4 }
  0x12   :  { %30 = vst [vmem:[#allocation5 + $0x8] sm:$0xff] %v28_v5  ;;  %p75_p8 = por %p74_p7, %p73_p6 }
  0x14   :  { %p76_p9 = pnand %p75_p8, %p69_p5 }
  0x16   :  { %79 = shalt.err (!%p76_p9)
}
  0x17   :  { %40 = dma.vmem_to_hbm [thread:$0]  %s38_s12, 256, %s111_s1, [#allocation4]  }
  0x18   :  { %90 = dma.done.wait [#allocation4], 256  }
  0x19   :  { %91 = vsyncadd [#allocation4], 4294967040 }
  0x1a   :  { %44 = vsyncpa [#allocation3], 1 }
  0x1b   :  { %45 = vsyncpa [#allocation4], 1 }

</bundles_post_ra>
